<compile_context>
chip_gen: v7x
topology: tpu7x:2x2x1
jax: 0.10.0
libtpu: 0.0.40
codegen_flags: <defaults>
</compile_context>

<pallas_src>
import functools
import math

import jax
import jax.numpy as jnp
import numpy as np
from jax.experimental import pallas as pl
from jax.experimental.pallas import tpu as pltpu


# ------------------------------- kernels -------------------------------------


def _proj_kernel(tf_ref, w_ref, b_ref, o_ref):
    """Fused per-residue projections: one lane-dense (tile, 2*c_z+c_m) matmul."""
    o_ref[...] = jnp.dot(tf_ref[...], w_ref[...],
                         preferred_element_type=jnp.float32) + b_ref[...]


def _z_kernel(a_ref, b_ref, ri_i_ref, ri_j_ref, wrel_ref, z_ref, *, vbins):
    """One (tile_i, tile_j) pair tile, written as a lane-dense merged slab.

    z_merged[i, j*c_z + c] = a_rot[i, c] + b_rot[j, c] + W_relpos[d[i, j], c]
    (rotation + relpos biases were folded into a_rot / b_rot on the host).
    """
    tile_i, c_z = a_ref.shape
    tile_j = b_ref.shape[0]
    num_classes = wrel_ref.shape[0]

    # pairwise clamped residue-index difference for this tile
    d = jnp.clip(ri_i_ref[...] - ri_j_ref[...], -vbins, vbins) + vbins   # (ti, tj)

    # One-hot built DIRECTLY in bf16 (exact for a one-hot) -> single-pass MXU
    # matmul with f32 accumulate.  W_relpos is bf16: ~2^-9 relative weight
    # quantization on the relpos term only, well inside the 2e-3 tolerance.
    classes = jax.lax.broadcasted_iota(jnp.int32, (tile_i, tile_j, num_classes), 2)
    onehot = (d[:, :, None] == classes).astype(jnp.bfloat16)
    relp = jnp.dot(onehot.reshape(tile_i * tile_j, num_classes), wrel_ref[...],
                   preferred_element_type=jnp.float32)
    relp = relp.reshape(tile_i, tile_j, c_z)          # leading-dim split: cheap

    # Broadcast add in the natural 3-D layout; merge the minor dims ONCE at the
    # end so the HBM store is fully lane-dense (tile_j*c_z is a 128 multiple).
    z3 = a_ref[...][:, None, :] + b_ref[...][None, :, :] + relp
    z_ref[...] = z3.reshape(tile_i, tile_j * c_z)


def _m_kernel(msa_ref, tfm_ref, wmsa_ref, m_ref, *, reps):
    """MSA representation for `reps` clusters per step, stored lane-dense.

    m[r, i*c_m + c] = (msa[r] @ W_msa^T)[i, c] + (tf_m + b_tf_m + b_msa)[i, c]
    """
    n_res, c_m = tfm_ref.shape
    w = wmsa_ref[...]
    tfm = tfm_ref[...]                           # hoisted tf_m (+ folded biases)
    rows = [jnp.dot(msa_ref[r], w, preferred_element_type=jnp.float32) + tfm
            for r in range(reps)]                # static unroll, reps <= 8
    m3 = jnp.stack(rows, axis=0)                 # (reps, n_res, c_m)
    m_ref[...] = m3.reshape(reps, n_res * c_m)   # single minor-dim merge


# ------------------------------- helpers --------------------------------------


def _rotation_block_diag(c_z, pH=7.7, temp=280.0, pH_range=(0.0, 14.0),
                         temp_range=(273.0, 300.0)):
    """BlockDiag(R)^T so that rotated = x @ rot_T, with R = R_y @ R_z."""
    th_p = (pH - pH_range[0]) / (pH_range[1] - pH_range[0]) * (math.pi / 2)
    th_t = (temp - temp_range[0]) / (temp_range[1] - temp_range[0]) * (math.pi / 2)
    R_z = np.array([[math.cos(th_p), -math.sin(th_p), 0.0],
                    [math.sin(th_p),  math.cos(th_p), 0.0],
                    [0.0, 0.0, 1.0]], dtype=np.float32)
    R_y = np.array([[math.cos(th_t), 0.0, math.sin(th_t)],
                    [0.0, 1.0, 0.0],
                    [-math.sin(th_t), 0.0, math.cos(th_t)]], dtype=np.float32)
    R = R_y @ R_z
    return jnp.asarray(np.kron(np.eye(c_z // 3, dtype=np.float32), R.T))


def _round_up(x, m):
    return ((x + m - 1) // m) * m


def _vmem_limit_bytes():
    """Generous scoped-VMEM budget, clamped below physical capacity (v7x: 64 MiB)."""
    try:
        cap = int(pltpu.get_tpu_info().vmem_capacity_bytes)
    except Exception:
        cap = 128 * 1024 * 1024
    return max(32 * 1024 * 1024, min(64 * 1024 * 1024, cap - 16 * 1024 * 1024))


# ------------------------------- wrapper ---------------------------------------


def input_embedder_forward(params, msa_feat, target_feat, residue_index, *, vbins=32):
    # strip the size-1 batch dims (the PyTorch module assumes batch == 1)
    msa = msa_feat[0]                                    # [N_clust, N_res, msa_dim]
    tf = target_feat[0]                                  # [N_res, tf_dim]
    ri = residue_index[0].astype(jnp.int32)              # [N_res]

    n_clust, n_res, msa_dim = msa.shape
    tf_dim = tf.shape[-1]
    c_z = params["w_tf_z_i"].shape[0]
    c_m = params["w_tf_m"].shape[0]
    assert c_z % 3 == 0, "C_z must be divisible by 3"
    num_classes = 2 * vbins + 1

    # ---- host-side constant folding ----------------------------------------
    # The rotation is a fixed linear map: fold it into the i/j weights & biases;
    # the relpos bias is folded into the j bias; b_msa is folded into tf_m.
    rot_T = _rotation_block_diag(c_z)                    # [c_z, c_z]
    wi_T = params["w_tf_z_i"].T @ rot_T                  # [tf_dim, c_z]
    bi = params["b_tf_z_i"] @ rot_T
    wj_T = params["w_tf_z_j"].T @ rot_T
    bj = params["b_tf_z_j"] @ rot_T + params["b_relpos"]
    wm_T = params["w_tf_m"].T
    bm = params["b_tf_m"]
    wrel_T = params["w_relpos"].T.astype(jnp.bfloat16)   # [65, c_z], bf16 MXU
    wmsa_T = params["w_msa_m"].T
    bmsa = params["b_msa_m"].reshape(1, c_m)

    n_cols = 2 * c_z + c_m                               # 128 for default dims
    w_cat = jnp.concatenate([wi_T, wj_T, wm_T], axis=1)  # [tf_dim, 2*c_z+c_m]
    b_cat = jnp.concatenate([bi, bj, bm]).reshape(1, n_cols)

    # ---- tile selection & residue padding -----------------------------------
    # tile_j must be a multiple of 128 (or the full extent) so that both the
    # (1, tile_j) residue-index block and the merged (tile_i, tile_j*c_z) output
    # block are lane-aligned; n_res is padded up to the tile and sliced after.
    if n_res <= 128:
        n_res_pad = _round_up(n_res, 8)
        tile_i = tile_j = n_res_pad
    else:
        tile_i = tile_j = 128
        n_res_pad = _round_up(n_res, 128)
    pad_r = n_res_pad - n_res
    tf_p = jnp.pad(tf, ((0, pad_r), (0, 0))) if pad_r else tf
    ri_p = jnp.pad(ri, (0, pad_r)) if pad_r else ri

    vmem_limit = _vmem_limit_bytes()

    # ---- prologue: fused per-residue projections (once, lane-dense) --------
    proj = pl.pallas_call(
        _proj_kernel,
        out_shape=jax.ShapeDtypeStruct((n_res_pad, n_cols), jnp.float32),
        grid=(n_res_pad // tile_i,),
        in_specs=[
            pl.BlockSpec((tile_i, tf_dim), lambda i: (i, 0)),   # target_feat rows
            pl.BlockSpec((tf_dim, n_cols), lambda i: (0, 0)),   # [Wi^T|Wj^T|Wm^T]
            pl.BlockSpec((1, n_cols), lambda i: (0, 0)),        # [bi|bj|bm]
        ],
        out_specs=pl.BlockSpec((tile_i, n_cols), lambda i: (i, 0)),
        compiler_params=pltpu.CompilerParams(dimension_semantics=("parallel",)),
    )(tf_p, w_cat, b_cat)

    a_rot = proj[:, :c_z]                                  # rotated i-projection
    b_rot = proj[:, c_z:2 * c_z]                           # rotated j-proj (+relpos bias)
    tfm_m = proj[:n_res, 2 * c_z:] + bmsa                  # tf_m with b_msa folded in

    # ---- pair representation: lane-dense merged output ----------------------
    ri_col = ri_p.reshape(n_res_pad, 1)
    ri_row = ri_p.reshape(1, n_res_pad)

    z_merged = pl.pallas_call(
        functools.partial(_z_kernel, vbins=vbins),
        out_shape=jax.ShapeDtypeStruct((n_res_pad, n_res_pad * c_z), jnp.float32),
        grid=(n_res_pad // tile_i, n_res_pad // tile_j),
        in_specs=[
            pl.BlockSpec((tile_i, c_z), lambda i, j: (i, 0)),        # a_rot rows
            pl.BlockSpec((tile_j, c_z), lambda i, j: (j, 0)),        # b_rot rows
            pl.BlockSpec((tile_i, 1), lambda i, j: (i, 0)),          # residue idx (i)
            pl.BlockSpec((1, tile_j), lambda i, j: (0, j)),          # residue idx (j)
            pl.BlockSpec((num_classes, c_z), lambda i, j: (0, 0)),   # W_relpos^T bf16
        ],
        out_specs=pl.BlockSpec((tile_i, tile_j * c_z), lambda i, j: (i, j)),
        compiler_params=pltpu.CompilerParams(
            dimension_semantics=("parallel", "parallel"),
            vmem_limit_bytes=vmem_limit),
    )(a_rot, b_rot, ri_col, ri_row, wrel_T)

    z = z_merged.reshape(n_res_pad, n_res_pad, c_z)
    if pad_r:
        z = z[:n_res, :n_res, :]

    # ---- MSA representation: batched clusters, hoisted tf_m, lane-dense -----
    if n_clust <= 8:
        reps = n_clust                                     # full extent is legal
        n_clust_pad = n_clust
        msa_p = msa
    else:
        reps = 8                                           # block 2nd-minor multiple of 8
        n_clust_pad = _round_up(n_clust, 8)
        msa_p = (jnp.pad(msa, ((0, n_clust_pad - n_clust), (0, 0), (0, 0)))
                 if n_clust_pad != n_clust else msa)

    m_merged = pl.pallas_call(
        functools.partial(_m_kernel, reps=reps),
        out_shape=jax.ShapeDtypeStruct((n_clust_pad, n_res * c_m), jnp.float32),
        grid=(n_clust_pad // reps,),
        in_specs=[
            pl.BlockSpec((reps, n_res, msa_dim), lambda r: (r, 0, 0)),  # msa clusters
            pl.BlockSpec((n_res, c_m), lambda r: (0, 0)),               # hoisted tf_m
            pl.BlockSpec((msa_dim, c_m), lambda r: (0, 0)),             # W_msa^T
        ],
        out_specs=pl.BlockSpec((reps, n_res * c_m), lambda r: (r, 0)),
        compiler_params=pltpu.CompilerParams(dimension_semantics=("parallel",),
                                             vmem_limit_bytes=vmem_limit),
    )(msa_p, tfm_m, wmsa_T)

    m = m_merged[:n_clust] if n_clust_pad != n_clust else m_merged
    m = m.reshape(n_clust, n_res, c_m)

    # re-attach the leading batch dim (matches m, z.unsqueeze(0) in PyTorch)
    return m[None], z[None]


# ------------------------------ reference (pure JAX) ---------------------------


def reference_forward(params, msa_feat, target_feat, residue_index, *, vbins=32):
    msa = msa_feat[0]
    tf = target_feat[0]
    ri = residue_index[0].astype(jnp.int32)
    c_z = params["w_tf_z_i"].shape[0]
    rot_T = _rotation_block_diag(c_z)

    a = tf @ params["w_tf_z_i"].T + params["b_tf_z_i"]
    b = tf @ params["w_tf_z_j"].T + params["b_tf_z_j"]
    a_rot = a @ rot_T
    b_rot = b @ rot_T
    z = a_rot[:, None, :] + b_rot[None, :, :]
    d = jnp.clip(ri[:, None] - ri[None, :], -vbins, vbins) + vbins
    onehot = jax.nn.one_hot(d, 2 * vbins + 1, dtype=jnp.float32)
    z = z + onehot @ params["w_relpos"].T + params["b_relpos"]
    tf_m = tf @ params["w_tf_m"].T + params["b_tf_m"]
    msa_m = msa @ params["w_msa_m"].T + params["b_msa_m"]
    m = msa_m + tf_m[None]
    return m[None], z[None]


# ------------------------------------ main -------------------------------------


def _linear_init(key, out_dim, in_dim):
    k_w, k_b = jax.random.split(key)
    bound = 1.0 / math.sqrt(in_dim)
    w = jax.random.uniform(k_w, (out_dim, in_dim), jnp.float32, -bound, bound)
    b = jax.random.uniform(k_b, (out_dim,), jnp.float32, -bound, bound)
    return w, b


if __name__ == "__main__":
    C_M, C_Z, TF_DIM, MSA_DIM, VBINS = 32, 48, 22, 49, 32
    N_CLUST, N_RES = 5, 20          # exercises residue padding (20 -> 24) + slicing

    key = jax.random.PRNGKey(0)
    k_params, k_msa, k_tf = jax.random.split(key, 3)
    kp = jax.random.split(k_params, 5)

    w_tf_z_i, b_tf_z_i = _linear_init(kp[0], C_Z, TF_DIM)
    w_tf_z_j, b_tf_z_j = _linear_init(kp[1], C_Z, TF_DIM)
    w_tf_m, b_tf_m = _linear_init(kp[2], C_M, TF_DIM)
    w_msa_m, b_msa_m = _linear_init(kp[3], C_M, MSA_DIM)
    w_relpos, b_relpos = _linear_init(kp[4], C_Z, 2 * VBINS + 1)

    params = dict(
        w_tf_z_i=w_tf_z_i, b_tf_z_i=b_tf_z_i,
        w_tf_z_j=w_tf_z_j, b_tf_z_j=b_tf_z_j,
        w_tf_m=w_tf_m, b_tf_m=b_tf_m,
        w_msa_m=w_msa_m, b_msa_m=b_msa_m,
        w_relpos=w_relpos, b_relpos=b_relpos,
    )

    msa_feat = jax.random.normal(k_msa, (1, N_CLUST, N_RES, MSA_DIM), jnp.float32)
    target_feat = jax.random.normal(k_tf, (1, N_RES, TF_DIM), jnp.float32)
    residue_index = (jnp.arange(N_RES, dtype=jnp.int32) * 5)[None]   # exercises clamping

    m, z = input_embedder_forward(params, msa_feat, target_feat, residue_index,
                                  vbins=VBINS)
    jax.block_until_ready((m, z))

    m_ref, z_ref = reference_forward(params, msa_feat, target_feat, residue_index,
                                     vbins=VBINS)
    assert m.shape == (1, N_CLUST, N_RES, C_M) and z.shape == (1, N_RES, N_RES, C_Z)
    np.testing.assert_allclose(np.asarray(m), np.asarray(m_ref), rtol=2e-3, atol=2e-3)
    np.testing.assert_allclose(np.asarray(z), np.asarray(z_ref), rtol=2e-3, atol=2e-3)

    print("KERNEL_OK")
</pallas_src>

<mosaic_0001>
module attributes {stable_mosaic.version = 11 : i64} {
  func.func @_proj_kernel(%arg0: i32, %arg1: memref<24x22xf32, #tpu.memory_space<vmem>>, %arg2: memref<22x128xf32, #tpu.memory_space<vmem>>, %arg3: memref<1x128xf32, #tpu.memory_space<vmem>>, %arg4: memref<24x128xf32, #tpu.memory_space<vmem>>) attributes {dimension_semantics = [#tpu.dimension_semantics<parallel>], iteration_bounds = array<i64: 1>, scalar_prefetch = 0 : i64, scratch_operands = 0 : i64, tpu.core_type = #tpu.core_type<tc>, window_params = [{transform_indices = @transform_0, window_bounds = array<i64: 24, 22>}, {pipeline_mode = #tpu.pipeline_mode<synchronous>, transform_indices = @transform_1, window_bounds = array<i64: 22, 128>}, {pipeline_mode = #tpu.pipeline_mode<synchronous>, transform_indices = @transform_2, window_bounds = array<i64: 1, 128>}, {transform_indices = @transform_3, window_bounds = array<i64: 24, 128>}]} {
    %c0 = arith.constant 0 : index
    %c0_0 = arith.constant 0 : index
    %0 = vector.load %arg1[%c0, %c0_0] : memref<24x22xf32, #tpu.memory_space<vmem>>, vector<24x22xf32>
    %c0_1 = arith.constant 0 : index
    %c0_2 = arith.constant 0 : index
    %1 = vector.load %arg2[%c0_1, %c0_2] : memref<22x128xf32, #tpu.memory_space<vmem>>, vector<22x128xf32>
    %cst = arith.constant dense<0.000000e+00> : vector<24x128xf32>
    %2 = tpu.matmul %0, %1, %cst {dimension_numbers = #tpu.dot_dimension_numbers<[1], [0], [0], [1], [0, 0, 1, 1], [], []>} : vector<24x22xf32>, vector<22x128xf32>, vector<24x128xf32> -> vector<24x128xf32>
    %c0_3 = arith.constant 0 : index
    %c0_4 = arith.constant 0 : index
    %3 = vector.load %arg3[%c0_3, %c0_4] : memref<1x128xf32, #tpu.memory_space<vmem>>, vector<1x128xf32>
    %4 = vector.broadcast %3 : vector<1x128xf32> to vector<24x128xf32>
    %5 = arith.addf %2, %4 : vector<24x128xf32>
    %c0_5 = arith.constant 0 : index
    %c0_6 = arith.constant 0 : index
    %6 = vector.load %arg4[%c0_5, %c0_6] : memref<24x128xf32, #tpu.memory_space<vmem>>, vector<24x128xf32>
    tpu.vector_store %arg4[%c0_5, %c0_6], %5 {strides = array<i32>} : memref<24x128xf32, #tpu.memory_space<vmem>>, vector<24x128xf32>,
    return
  }
  func.func @transform_0(%arg0: i32) -> (i32, i32) {
    %c0_i32 = arith.constant 0 : i32
    %c0_i32_0 = arith.constant 0 : i32
    return %arg0, %c0_i32 : i32, i32
  }
  func.func @transform_1(%arg0: i32) -> (i32, i32) {
    %c0_i32 = arith.constant 0 : i32
    %c0_i32_0 = arith.constant 0 : i32
    %c0_i32_1 = arith.constant 0 : i32
    return %c0_i32, %c0_i32_0 : i32, i32
  }
  func.func @transform_2(%arg0: i32) -> (i32, i32) {
    %c0_i32 = arith.constant 0 : i32
    %c0_i32_0 = arith.constant 0 : i32
    %c0_i32_1 = arith.constant 0 : i32
    return %c0_i32, %c0_i32_0 : i32, i32
  }
  func.func @transform_3(%arg0: i32) -> (i32, i32) {
    %c0_i32 = arith.constant 0 : i32
    %c0_i32_0 = arith.constant 0 : i32
    return %arg0, %c0_i32 : i32, i32
  }
}

</mosaic_0001>

<bundles_post_ra>
// kernel: tpu_custom_call.1
= control target key start
LH: loop header
LB: loop body
LE: loop exit
PB: predicated region body
PF: predicated region fallthrough
CT: control target
= control target key end

     0   :  { %8 = vsyncpa [#allocation3], 0  ;;  %s363_s0 = inlined_call_operand.hbm [shape: f32[24,22], index: 0, kind: input, shape index: {}]   ;;  %s364_s1 = inlined_call_operand.hbm [shape: f32[22,128], index: 1, kind: input, shape index: {}]   ;;  %s365_s2 = inlined_call_operand.vmem [shape: f32[1,128], index: 2, kind: input, shape index: {}]   ;;  %s366_s3 = inlined_call_operand.hbm [shape: f32[24,128], index: 3, kind: output, shape index: {}]  }
   0x1   :  { %9 = vsyncpa [#allocation6], 0 }
   0x2   :  { %10 = vsyncpa [#allocation4], 0  ;;  %s284_s12 = smov [#allocation2]   ;;  %s212_s16 = scalar_lea.hbm %s363_s0, 384 }
   0x3   :  { %s16_s13 = sshll.u32 %s284_s12, 4  ;;  %p213_p0 = scmp.ne.s32.totalorder %s363_s0, %s212_s16  ;;  %s17_s13 = int_to_ptr.vmem [resolvable:$true] %s16_s13 }
   0x4   :  { %p216_p1 = scmp.lt.u32.totalorder %s212_s16, %s363_s0 }
   0x6   :  { %p218_p2 = pnand %p216_p1, %p213_p0 }
   0x8   :  { %221 = shalt.err (!%p218_p2)
}
   0x9   :  { %s222_s21 = scalar_lea.vmem %s17_s13, 384  ;;  %p227_p4 = scmp.lt.s32.totalorder %s17_s13, %s17_s13 }
   0xa   :  { %p223_p3 = scmp.ne.s32.totalorder %s17_s13, %s222_s21  ;;  %p228_p5 = scmp.lt.s32.totalorder %s222_s21, %s222_s21 }
   0xc   :  { %p229_p6 = por %p228_p5, %p227_p4 }
   0xe   :  { %p230_p7 = pnand %p229_p6, %p223_p3 }
  0x10   :  { %233 = shalt.err (!%p230_p7)
}
  0x11   :  { %s285_s22 = smov 128   ;;  %s286_s23 = smov 8  }
  0x12   :  { %22 = dma.hbm_to_vmem [thread:$0]  %s363_s0, 384, %s17_s13, [#allocation3], %s285_s22, %s285_s22, %s286_s23  }
  0x13   :  { %s287_s26 = smov [#allocation5]   ;;  %s234_s30 = scalar_lea.hbm %s364_s1, 384 }
  0x14   :  { %s28_s27 = sshll.u32 %s287_s26, 4  ;;  %p235_p8 = scmp.ne.s32.totalorder %s364_s1, %s234_s30  ;;  %s29_s27 = int_to_ptr.vmem [resolvable:$true] %s28_s27 }
  0x15   :  { %p238_p9 = scmp.lt.u32.totalorder %s234_s30, %s364_s1 }
  0x17   :  { %p240_p10 = pnand %p238_p9, %p235_p8 }
  0x19   :  { %243 = shalt.err (!%p240_p10)
}
  0x1a   :  { %s244_s8 = scalar_lea.vmem %s29_s27, 384  ;;  %p249_p12 = scmp.lt.s32.totalorder %s29_s27, %s29_s27 }
  0x1b   :  { %p245_p11 = scmp.ne.s32.totalorder %s29_s27, %s244_s8  ;;  %p250_p13 = scmp.lt.s32.totalorder %s244_s8, %s244_s8 }
  0x1d   :  { %p251_p0 = por %p250_p13, %p249_p12 }
  0x1f   :  { %p252_p1 = pnand %p251_p0, %p245_p11 }
  0x21   :  { %255 = shalt.err (!%p252_p1)
}
  0x22   :  { %34 = dma.hbm_to_vmem [thread:$0]  %s364_s1, 384, %s29_s27, [#allocation6], %s285_s22, %s285_s22, %s286_s23  }
  0x23   :  { %278 = dma.done.wait [#allocation3], 384  }
  0x24   :  { %279 = vsyncadd [#allocation3], 4294966912 }
  0x25   :  { %280 = dma.done.wait [#allocation6], 384  }
  0x26   :  { %281 = vsyncadd [#allocation6], 4294966912  ;;  %v288_v0 = vmov 0.0|0.0   ;;  %vm289_vm0 = vmmov 0   ;;  %v290_v1 = vmov 0.0   ;;  %v46_v2 = vld [vmem:[#allocation5] sm:$0xff] }
  0x27   :  { %200 = vmatprep.subr.bf16.mxu1 %v288_v0  ;;  %197 = vmatprep.subr.bf16.mxu0 %v288_v0  ;;  %v47_v3 = vld [vmem:[#allocation5 + $0x8] sm:$0xff]  ;;  %v48_v5 = vld [vmem:[#allocation5 + $0x10] sm:$0x3f]  ;;  %vm66_vm1 = vcmask 1045504   ;;  %vm56_vm2 = vcmask 179200   ;;  %v45_v8 = vld [vmem:[#allocation2 + $0x10] sm:$0xff] }
  0x28   :  { %191 = vmatprep.mubr.msk.f32.mxu1 %vm289_vm0, %v290_v1  ;;  %188 = vmatprep.mubr.msk.f32.mxu0 %vm289_vm0, %v290_v1  ;;  %v198_v4 = vpack.c.bf16 %v47_v3, %v46_v2  ;;  %v44_v6 = vld [vmem:[#allocation2 + $0x8] sm:$0xff]  ;;  %v43_v7 = vld [vmem:[#allocation2] sm:$0xff]  ;;  %s291_s11 = smov [#allocation7]  }
  0x29   :  { %v171_v9 = vld [vmem:[%s365_s2] ss:$0 sm:$0xff]  ;;  %s158_s12 = sshll.u32 %s291_s11, 4  ;;  %s159_s12 = int_to_ptr.vmem [resolvable:$true] %s158_s12 }
  0x2a   :  { %202 = vmatpush3.bf16.msra.mxu1 %v198_v4  ;;  %199 = vmatpush3.bf16.msra.mxu0 %v198_v4  ;;  %s256_s13 = scalar_lea.vmem %s159_s12, 384  ;;  %p261_p3 = scmp.lt.s32.totalorder %s159_s12, %s159_s12 }
  0x2b   :  { %201 = vmatprep.subr.mxu1 %v290_v1  ;;  %186 = vmatprep.subr.mxu0 %v290_v1  ;;  %p257_p2 = scmp.ne.s32.totalorder %s159_s12, %s256_s13  ;;  %p262_p4 = scmp.lt.s32.totalorder %s256_s13, %s256_s13 }
  0x2d   :  { %p263_p5 = por %p262_p4, %p261_p3 }
  0x2e   :  { %203 = vmatpush3.msk.msra.mxu1 %vm66_vm1, %v48_v5  ;;  %187 = vmatpush3.msk.msra.mxu0 %vm66_vm1, %v48_v5 }
  0x2f   :  { %192 = vmatmul.mubr.msk.f32.vlgmr.msra.gmra.mrb[0].mxu1 %vm56_vm2, %v44_v6  ;;  %189 = vmatmul.mubr.msk.f32.vlgmr.msra.gmra.mrb[0].mxu0 %vm56_vm2, %v43_v7  ;;  %p264_p6 = pnand %p263_p5, %p257_p2 }
  0x30   :  { %194 = vmatprep.mubr.msk.f32.mxu1 %vm289_vm0, %v290_v1 }
  0x33   :  { %195 = vmatmul.mubr.msk.f32.gmra.mrb[2].mxu1 %vm56_vm2, %v45_v8 }
 0x102   :  { %v141_v10 = vpop.f32.mrb[0].mxu1  ;;  %v136_v11 = vpop.f32.mrb[0].mxu0 }
 0x103   :  { %v142_v12 = vadd.f32 %v171_v9, %v141_v10  ;;  %v193_v13 = vpop.f32.mrb[1].mxu1  ;;  %v137_v14 = vadd.f32 %v171_v9, %v136_v11  ;;  %v190_v15 = vpop.f32.mrb[1].mxu0 }
 0x105   :  { %151 = vst [vmem:[#allocation7 + $0x8] sm:$0xff] %v142_v12  ;;  %150 = vst [vmem:[#allocation7] sm:$0xff] %v137_v14 }
 0x106   :  { %v146_v16 = vpop.f32.mrb[2].mxu1 }
 0x107   :  { %v147_v17 = vadd.f32 %v171_v9, %v146_v16  ;;  %v196_v18 = vpop.f32.mrb[3].mxu1 }
 0x109   :  { %152 = vst [vmem:[#allocation7 + $0x10] sm:$0xff] %v147_v17 }
 0x10a   :  { %267 = shalt.err (!%p264_p6)
}
 0x10b   :  { %s268_s15 = scalar_lea.hbm %s366_s3, 384 }
 0x10c   :  { %p269_p7 = scmp.ne.s32.totalorder %s366_s3, %s268_s15  ;;  %p272_p8 = scmp.lt.u32.totalorder %s268_s15, %s366_s3 }
 0x10e   :  { %p274_p9 = pnand %p272_p8, %p269_p7 }
 0x110   :  { %277 = shalt.err (!%p274_p9)
}
 0x111   :  { %164 = dma.vmem_to_hbm [thread:$0]  %s159_s12, 384, %s366_s3, [#allocation4], %s285_s22, %s285_s22, %s286_s23  }
 0x112   :  { %282 = dma.done.wait [#allocation4], 384  }
 0x113   :  { %283 = vsyncadd [#allocation4], 4294966912 }
 0x114   :  { %168 = vsyncpa [#allocation3], 1 }
 0x115   :  { %169 = vsyncpa [#allocation6], 1 }
 0x116   :  { %170 = vsyncpa [#allocation4], 1 }

</bundles_post_ra>
